<compile_context>
chip_gen: v7x
topology: tpu7x:2x2x1
jax: 0.10.0
libtpu: 0.0.40
codegen_flags: <defaults>
</compile_context>

<pallas_src>
import functools

import jax
import jax.numpy as jnp
from jax.experimental import pallas as pl
from jax.experimental.pallas import tpu as pltpu

EPS = 1e-5


def _vmem_capacity_bytes():
    """Physical VMEM per core; conservative v7x value if the query fails."""
    try:
        return int(pltpu.get_tpu_info().vmem_capacity_bytes)
    except Exception:
        return 64 * 2 ** 20


def _pick_tile(hw, per_col_bytes, budget):
    """Largest HW tile whose working set fits `budget`.

    Returns the full extent when it fits (always a legal block); otherwise a
    multiple of 128 — the last (partial) tile is handled via pl.cdiv grids
    with in-kernel masking (stats) / discarded OOB stores (fuse)."""
    cap = max(128, (budget // max(per_col_bytes, 1)) // 128 * 128)
    if hw <= cap:
        return int(hw)
    return int(cap)


# --------------------------------------------------------------------------
# Fused single-pass kernel: whole sample resident in VMEM.
# --------------------------------------------------------------------------
def gam_fused_kernel(x_ref, w1m_ref, w1s_ref, w2_ref, wfx_ref, wfg_ref, bf_ref,
                     o_ref, *, hw_total):
    x = x_ref[0]                                    # (C, HW), input dtype
    xf = x.astype(jnp.float32)

    # Two-pass (shifted) variance: avoids E[x^2]-mean^2 cancellation; cheap
    # because the sample is already resident in VMEM.
    mean = jnp.sum(xf, axis=1, keepdims=True) * (1.0 / hw_total)      # (C, 1)
    centered = xf - mean
    denom = 1.0 / float(max(hw_total - 1, 1))       # guard H*W == 1
    var = jnp.sum(centered * centered, axis=1, keepdims=True) * denom + EPS
    std = jnp.sqrt(var)                             # (C, 1)

    # h = relu(W1_mean @ mean + W1_std @ std)  -- w1 split, no concatenate.
    h = jnp.maximum(
        jnp.dot(w1m_ref[...], mean, preferred_element_type=jnp.float32)
        + jnp.dot(w1s_ref[...], std, preferred_element_type=jnp.float32),
        0.0)                                        # (hidden, 1)
    g = jnp.dot(w2_ref[...], h, preferred_element_type=jnp.float32)   # (out_nc, 1)
    bias = (jnp.dot(wfg_ref[...], g, preferred_element_type=jnp.float32)
            + bf_ref[...])                          # (out_nc, 1)

    # Fuse conv: per-pixel part + per-sample constant part.
    per_pixel = jnp.dot(wfx_ref[...], x, preferred_element_type=jnp.float32)
    o_ref[0] = (per_pixel + bias).astype(o_ref.dtype)


# --------------------------------------------------------------------------
# Fallback pass 1: per-sample spatial statistics + tiny MLP -> bias column.
# --------------------------------------------------------------------------
def gam_stats_kernel(x_ref, w1m_ref, w1s_ref, w2_ref, wfg_ref, bf_ref,
                     bias_ref, sum_ref, sq_ref, *, hw_total, tile):
    t = pl.program_id(1)

    @pl.when(t == 0)
    def _():
        sum_ref[...] = jnp.zeros_like(sum_ref)
        sq_ref[...] = jnp.zeros_like(sq_ref)

    x = x_ref[0].astype(jnp.float32)                        # (C, T)
    # Mask out-of-range columns of a partial last tile (HW not multiple of T).
    col = jax.lax.broadcasted_iota(jnp.int32, x.shape, 1) + t * tile
    x = jnp.where(col < hw_total, x, 0.0)
    sum_ref[...] += jnp.sum(x, axis=1, keepdims=True)       # (C, 1)
    sq_ref[...] += jnp.sum(x * x, axis=1, keepdims=True)    # (C, 1)

    @pl.when(t == pl.num_programs(1) - 1)
    def _():
        # TODO(synk): fallback uses one-pass variance (f32 accumulators); the
        # fused path uses the numerically safer two-pass form.
        s = sum_ref[...]
        mean = s * (1.0 / hw_total)                         # (C, 1)
        denom = float(max(hw_total - 1, 1))
        var = jnp.maximum(sq_ref[...] - s * mean, 0.0) * (1.0 / denom) + EPS
        std = jnp.sqrt(var)                                 # (C, 1)

        h = jnp.maximum(
            jnp.dot(w1m_ref[...], mean, preferred_element_type=jnp.float32)
            + jnp.dot(w1s_ref[...], std, preferred_element_type=jnp.float32),
            0.0)                                            # (hidden, 1)
        g = jnp.dot(w2_ref[...], h, preferred_element_type=jnp.float32)
        bias_ref[0] = (
            jnp.dot(wfg_ref[...], g, preferred_element_type=jnp.float32)
            + bf_ref[...])                                  # (out_nc, 1)


# --------------------------------------------------------------------------
# Fallback pass 2: lane-dense fuse  out = Wf_x @ x + bias  (per HW tile).
# --------------------------------------------------------------------------
def gam_fuse_kernel(x_ref, wfx_ref, bias_ref, o_ref):
    per_pixel = jnp.dot(wfx_ref[...], x_ref[0],
                        preferred_element_type=jnp.float32)     # (out_nc, T)
    o_ref[0] = (per_pixel + bias_ref[0]).astype(o_ref.dtype)


def gam_forward(x_nchw, w1, w2, wf, bf, *, force_two_pass=False,
                tile_budget_override=None):
    """x_nchw: (N, C, H, W); w1: (hidden, 2C); w2: (out_nc, hidden);
    wf: (out_nc, 2C); bf: (out_nc,).  Returns (N, out_nc, H, W)."""
    N, C, H, W = x_nchw.shape
    HW = H * W
    hidden = w1.shape[0]
    out_nc = wf.shape[0]
    assert out_nc == C, "expand_as in the reference module requires out_nc == in_nc"

    dt = x_nchw.dtype
    itemsize = jnp.dtype(dt).itemsize
    x = x_nchw.reshape(N, C, HW)                 # metadata-only reshape

    # Split weights; no transposes needed in the channel-major orientation.
    w1m = w1[:, :C].astype(jnp.float32)          # (hidden, C)  acts on mean
    w1s = w1[:, C:].astype(jnp.float32)          # (hidden, C)  acts on std
    w2f = w2.astype(jnp.float32)                 # (out_nc, hidden)
    wfx = wf[:, :C].astype(dt)                   # (out_nc, C)  per-pixel part
    wfg = wf[:, C:].astype(jnp.float32)          # (out_nc, C)  applied to g
    bfc = bf.reshape(out_nc, 1).astype(jnp.float32)

    capacity = _vmem_capacity_bytes()
    # ~30% of physical VMEM for the tiled working set (~19 MiB on v7x, ~38 MiB
    # on v5e/v6e); ~60% (capped) as the compiler's scoped-vmem limit.
    tile_budget = (int(tile_budget_override) if tile_budget_override is not None
                   else int(0.30 * capacity))
    vmem_limit = int(max(16 * 2 ** 20, min(int(0.60 * capacity), 100 * 2 ** 20)))

    weight_bytes = ((2 * hidden * C + out_nc * hidden + out_nc * C + out_nc) * 4
                    + out_nc * C * itemsize)

    # ---- fused path: whole sample resident in VMEM (x read once) ----
    fused_bytes = (2 * (C + out_nc) * HW * itemsize    # x/out blocks, double-buffered
                   + (2 * C + out_nc) * HW * 4         # f32 temporaries
                   + weight_bytes)
    if (not force_two_pass) and fused_bytes <= tile_budget:
        out = pl.pallas_call(
            functools.partial(gam_fused_kernel, hw_total=HW),
            out_shape=jax.ShapeDtypeStruct((N, out_nc, HW), dt),
            grid_spec=pltpu.PrefetchScalarGridSpec(
                num_scalar_prefetch=0,
                grid=(N,),
                in_specs=[
                    pl.BlockSpec((1, C, HW), lambda n: (n, 0, 0)),
                    pl.BlockSpec((hidden, C), lambda n: (0, 0)),
                    pl.BlockSpec((hidden, C), lambda n: (0, 0)),
                    pl.BlockSpec((out_nc, hidden), lambda n: (0, 0)),
                    pl.BlockSpec((out_nc, C), lambda n: (0, 0)),
                    pl.BlockSpec((out_nc, C), lambda n: (0, 0)),
                    pl.BlockSpec((out_nc, 1), lambda n: (0, 0)),
                ],
                out_specs=pl.BlockSpec((1, out_nc, HW), lambda n: (n, 0, 0)),
            ),
            compiler_params=pltpu.CompilerParams(
                dimension_semantics=("parallel",),
                vmem_limit_bytes=vmem_limit),
        )(x, w1m, w1s, w2f, wfx, wfg, bfc)
        return out.reshape(N, out_nc, H, W)

    # ---- fallback: two tiled passes over HW (sample too big for VMEM) ----
    # Pass 1 streams only x, so it can afford a larger tile than pass 2.
    p1_col_bytes = 2 * C * itemsize + 2 * C * 4
    p2_col_bytes = 2 * (C + out_nc) * itemsize + out_nc * 4
    T1 = _pick_tile(HW, p1_col_bytes, tile_budget)
    T2 = _pick_tile(HW, p2_col_bytes, tile_budget)
    num_t1 = pl.cdiv(HW, T1)
    num_t2 = pl.cdiv(HW, T2)

    # pass 1: stats + MLP -> per-sample bias column (N, out_nc, 1)
    bias = pl.pallas_call(
        functools.partial(gam_stats_kernel, hw_total=HW, tile=T1),
        out_shape=jax.ShapeDtypeStruct((N, out_nc, 1), jnp.float32),
        grid_spec=pltpu.PrefetchScalarGridSpec(
            num_scalar_prefetch=0,
            grid=(N, num_t1),
            in_specs=[
                pl.BlockSpec((1, C, T1), lambda n, t: (n, 0, t)),
                pl.BlockSpec((hidden, C), lambda n, t: (0, 0)),
                pl.BlockSpec((hidden, C), lambda n, t: (0, 0)),
                pl.BlockSpec((out_nc, hidden), lambda n, t: (0, 0)),
                pl.BlockSpec((out_nc, C), lambda n, t: (0, 0)),
                pl.BlockSpec((out_nc, 1), lambda n, t: (0, 0)),
            ],
            out_specs=pl.BlockSpec((1, out_nc, 1), lambda n, t: (n, 0, 0)),
            scratch_shapes=[pltpu.VMEM((C, 1), jnp.float32),
                            pltpu.VMEM((C, 1), jnp.float32)],
        ),
        compiler_params=pltpu.CompilerParams(
            dimension_semantics=("parallel", "arbitrary"),
            vmem_limit_bytes=vmem_limit),
    )(x, w1m, w1s, w2f, wfg, bfc)

    # pass 2: fuse conv, lane-dense output (N, out_nc, HW)
    out = pl.pallas_call(
        gam_fuse_kernel,
        out_shape=jax.ShapeDtypeStruct((N, out_nc, HW), dt),
        grid_spec=pltpu.PrefetchScalarGridSpec(
            num_scalar_prefetch=0,
            grid=(N, num_t2),
            in_specs=[
                pl.BlockSpec((1, C, T2), lambda n, t: (n, 0, t)),
                pl.BlockSpec((out_nc, C), lambda n, t: (0, 0)),
                pl.BlockSpec((1, out_nc, 1), lambda n, t: (n, 0, 0)),
            ],
            out_specs=pl.BlockSpec((1, out_nc, T2), lambda n, t: (n, 0, t)),
        ),
        compiler_params=pltpu.CompilerParams(
            dimension_semantics=("parallel", "parallel"),
            vmem_limit_bytes=vmem_limit),
    )(x, wfx, bias)

    return out.reshape(N, out_nc, H, W)          # metadata-only reshape


def gam_reference(x_nchw, w1, w2, wf, bf):
    """Pure-JAX reference mirroring the PyTorch forward."""
    N, C, H, W = x_nchw.shape
    xf = x_nchw.reshape(N, C, -1)
    mean = xf.mean(-1)
    var = xf.var(-1, ddof=1) + EPS
    std = jnp.sqrt(var)
    stats = jnp.concatenate([mean, std], axis=1)          # (N, 2C)
    h = jax.nn.relu(stats @ w1.T)
    g = h @ w2.T                                          # (N, out_nc)
    cat = jnp.concatenate(
        [x_nchw, jnp.broadcast_to(g[:, :, None, None], x_nchw.shape)], axis=1
    )                                                     # (N, 2C, H, W)
    out = jnp.einsum("nchw,oc->nohw", cat, wf) + bf[None, :, None, None]
    return out


if __name__ == "__main__":
    # small shapes consistent with the module: in_nc=32, reduction=8, out_nc=32
    N, C, H, W = 2, 32, 16, 16
    reduction = 8
    hidden = C // reduction
    out_nc = C

    key = jax.random.PRNGKey(0)
    kx, k1, k2, kf, kb = jax.random.split(key, 5)
    x = jax.random.normal(kx, (N, C, H, W), dtype=jnp.float32)
    w1 = jax.random.normal(k1, (hidden, 2 * C), dtype=jnp.float32) * 0.1   # conv[0] weight
    w2 = jax.random.normal(k2, (out_nc, hidden), dtype=jnp.float32) * 0.1  # conv[2] weight
    wf = jax.random.normal(kf, (out_nc, 2 * C), dtype=jnp.float32) * 0.1   # fuse weight
    bf = jax.random.normal(kb, (out_nc,), dtype=jnp.float32) * 0.1         # fuse bias

    ref = gam_reference(x, w1, w2, wf, bf)

    # 1) fused x-resident path (default)
    out = jax.block_until_ready(gam_forward(x, w1, w2, wf, bf))
    assert out.shape == (N, out_nc, H, W)
    assert jnp.allclose(out, ref, rtol=1e-4, atol=1e-4), "fused path mismatch"

    # 2) tiled two-pass fallback (forced small budget -> multiple HW tiles)
    out2 = jax.block_until_ready(
        gam_forward(x, w1, w2, wf, bf, force_two_pass=True,
                    tile_budget_override=64 * 1024))
    assert jnp.allclose(out2, ref, rtol=1e-4, atol=1e-4), "two-pass path mismatch"

    # 3) ragged spatial extent (HW=144, not a multiple of 128) on both paths
    x3 = jax.random.normal(jax.random.PRNGKey(1), (N, C, 12, 12), dtype=jnp.float32)
    ref3 = gam_reference(x3, w1, w2, wf, bf)
    out3 = jax.block_until_ready(gam_forward(x3, w1, w2, wf, bf))
    assert jnp.allclose(out3, ref3, rtol=1e-4, atol=1e-4), "fused ragged mismatch"
    out4 = jax.block_until_ready(
        gam_forward(x3, w1, w2, wf, bf, force_two_pass=True,
                    tile_budget_override=32 * 1024))
    assert jnp.allclose(out4, ref3, rtol=1e-4, atol=1e-4), "two-pass ragged mismatch"

    print("KERNEL_OK")
</pallas_src>

<mosaic_0001>
module attributes {stable_mosaic.version = 11 : i64} {
  func.func @gam_fused_kernel(%arg0: i32, %arg1: memref<1x32x256xf32, #tpu.memory_space<vmem>>, %arg2: memref<4x32xf32, #tpu.memory_space<vmem>>, %arg3: memref<4x32xf32, #tpu.memory_space<vmem>>, %arg4: memref<32x4xf32, #tpu.memory_space<vmem>>, %arg5: memref<32x32xf32, #tpu.memory_space<vmem>>, %arg6: memref<32x32xf32, #tpu.memory_space<vmem>>, %arg7: memref<32x1xf32, #tpu.memory_space<vmem>>, %arg8: memref<1x32x256xf32, #tpu.memory_space<vmem>>) attributes {dimension_semantics = [#tpu.dimension_semantics<parallel>], iteration_bounds = array<i64: 2>, scalar_prefetch = 0 : i64, scratch_operands = 0 : i64, tpu.core_type = #tpu.core_type<tc>, window_params = [{transform_indices = @transform_0, window_bounds = array<i64: 1, 32, 256>}, {pipeline_mode = #tpu.pipeline_mode<synchronous>, transform_indices = @transform_1, window_bounds = array<i64: 4, 32>}, {pipeline_mode = #tpu.pipeline_mode<synchronous>, transform_indices = @transform_2, window_bounds = array<i64: 4, 32>}, {pipeline_mode = #tpu.pipeline_mode<synchronous>, transform_indices = @transform_3, window_bounds = array<i64: 32, 4>}, {pipeline_mode = #tpu.pipeline_mode<synchronous>, transform_indices = @transform_4, window_bounds = array<i64: 32, 32>}, {pipeline_mode = #tpu.pipeline_mode<synchronous>, transform_indices = @transform_5, window_bounds = array<i64: 32, 32>}, {pipeline_mode = #tpu.pipeline_mode<synchronous>, transform_indices = @transform_6, window_bounds = array<i64: 32, 1>}, {transform_indices = @transform_7, window_bounds = array<i64: 1, 32, 256>}]} {
    %c0 = arith.constant 0 : index
    %c0_0 = arith.constant 0 : index
    %c0_1 = arith.constant 0 : index
    %0 = vector.load %arg1[%c0, %c0_0, %c0_1] : memref<1x32x256xf32, #tpu.memory_space<vmem>>, vector<1x32x256xf32>
    %1 = vector.shape_cast %0 : vector<1x32x256xf32> to vector<32x256xf32>
    %cst = arith.constant dense<0.000000e+00> : vector<32xf32>
    %2 = vector.multi_reduction <add>, %1, %cst [1] : vector<32x256xf32> to vector<32xf32>
    %3 = vector.shape_cast %2 : vector<32xf32> to vector<32x1xf32>
    %cst_2 = arith.constant 3.906250e-03 : f32
    %4 = vector.broadcast %cst_2 : f32 to vector<32x1xf32>
    %5 = arith.mulf %3, %4 : vector<32x1xf32>
    %6 = vector.broadcast %5 : vector<32x1xf32> to vector<32x256xf32>
    %7 = arith.subf %1, %6 : vector<32x256xf32>
    %8 = arith.mulf %7, %7 : vector<32x256xf32>
    %cst_3 = arith.constant dense<0.000000e+00> : vector<32xf32>
    %9 = vector.multi_reduction <add>, %8, %cst_3 [1] : vector<32x256xf32> to vector<32xf32>
    %10 = vector.shape_cast %9 : vector<32xf32> to vector<32x1xf32>
    %cst_4 = arith.constant 0.00392156886 : f32
    %11 = vector.broadcast %cst_4 : f32 to vector<32x1xf32>
    %12 = arith.mulf %10, %11 : vector<32x1xf32>
    %cst_5 = arith.constant 9.99999974E-6 : f32
    %13 = vector.broadcast %cst_5 : f32 to vector<32x1xf32>
    %14 = arith.addf %12, %13 : vector<32x1xf32>
    %15 = math.sqrt %14 : vector<32x1xf32>
    %c0_6 = arith.constant 0 : index
    %c0_7 = arith.constant 0 : index
    %16 = vector.load %arg2[%c0_6, %c0_7] : memref<4x32xf32, #tpu.memory_space<vmem>>, vector<4x32xf32>
    %cst_8 = arith.constant dense<0.000000e+00> : vector<4x1xf32>
    %17 = tpu.matmul %16, %5, %cst_8 {dimension_numbers = #tpu.dot_dimension_numbers<[1], [0], [0], [1], [0, 0, 1, 1], [], []>} : vector<4x32xf32>, vector<32x1xf32>, vector<4x1xf32> -> vector<4x1xf32>
    %c0_9 = arith.constant 0 : index
    %c0_10 = arith.constant 0 : index
    %18 = vector.load %arg3[%c0_9, %c0_10] : memref<4x32xf32, #tpu.memory_space<vmem>>, vector<4x32xf32>
    %cst_11 = arith.constant dense<0.000000e+00> : vector<4x1xf32>
    %19 = tpu.matmul %18, %15, %cst_11 {dimension_numbers = #tpu.dot_dimension_numbers<[1], [0], [0], [1], [0, 0, 1, 1], [], []>} : vector<4x32xf32>, vector<32x1xf32>, vector<4x1xf32> -> vector<4x1xf32>
    %20 = arith.addf %17, %19 : vector<4x1xf32>
    %cst_12 = arith.constant 0.000000e+00 : f32
    %21 = vector.broadcast %cst_12 : f32 to vector<4x1xf32>
    %22 = arith.maximumf %20, %21 : vector<4x1xf32>
    %c0_13 = arith.constant 0 : index
    %c0_14 = arith.constant 0 : index
    %23 = vector.load %arg4[%c0_13, %c0_14] : memref<32x4xf32, #tpu.memory_space<vmem>>, vector<32x4xf32>
    %cst_15 = arith.constant dense<0.000000e+00> : vector<32x1xf32>
    %24 = tpu.matmul %23, %22, %cst_15 {dimension_numbers = #tpu.dot_dimension_numbers<[1], [0], [0], [1], [0, 0, 1, 1], [], []>} : vector<32x4xf32>, vector<4x1xf32>, vector<32x1xf32> -> vector<32x1xf32>
    %c0_16 = arith.constant 0 : index
    %c0_17 = arith.constant 0 : index
    %25 = vector.load %arg6[%c0_16, %c0_17] : memref<32x32xf32, #tpu.memory_space<vmem>>, vector<32x32xf32>
    %cst_18 = arith.constant dense<0.000000e+00> : vector<32x1xf32>
    %26 = tpu.matmul %25, %24, %cst_18 {dimension_numbers = #tpu.dot_dimension_numbers<[1], [0], [0], [1], [0, 0, 1, 1], [], []>} : vector<32x32xf32>, vector<32x1xf32>, vector<32x1xf32> -> vector<32x1xf32>
    %c0_19 = arith.constant 0 : index
    %c0_20 = arith.constant 0 : index
    %27 = vector.load %arg7[%c0_19, %c0_20] : memref<32x1xf32, #tpu.memory_space<vmem>>, vector<32x1xf32>
    %28 = arith.addf %26, %27 : vector<32x1xf32>
    %c0_21 = arith.constant 0 : index
    %c0_22 = arith.constant 0 : index
    %29 = vector.load %arg5[%c0_21, %c0_22] : memref<32x32xf32, #tpu.memory_space<vmem>>, vector<32x32xf32>
    %cst_23 = arith.constant dense<0.000000e+00> : vector<32x256xf32>
    %30 = tpu.matmul %29, %1, %cst_23 {dimension_numbers = #tpu.dot_dimension_numbers<[1], [0], [0], [1], [0, 0, 1, 1], [], []>} : vector<32x32xf32>, vector<32x256xf32>, vector<32x256xf32> -> vector<32x256xf32>
    %31 = vector.broadcast %28 : vector<32x1xf32> to vector<32x256xf32>
    %32 = arith.addf %30, %31 : vector<32x256xf32>
    %c0_24 = arith.constant 0 : index
    %c0_25 = arith.constant 0 : index
    %c0_26 = arith.constant 0 : index
    %33 = vector.load %arg8[%c0_24, %c0_25, %c0_26] : memref<1x32x256xf32, #tpu.memory_space<vmem>>, vector<1x32x256xf32>
    %34 = vector.shape_cast %33 : vector<1x32x256xf32> to vector<32x256xf32>
    %35 = vector.shape_cast %32 : vector<32x256xf32> to vector<1x32x256xf32>
    tpu.vector_store %arg8[%c0_24, %c0_25, %c0_26], %35 {strides = array<i32>} : memref<1x32x256xf32, #tpu.memory_space<vmem>>, vector<1x32x256xf32>,
    return
  }
  func.func @transform_0(%arg0: i32) -> (i32, i32, i32) {
    %c0_i32 = arith.constant 0 : i32
    %c0_i32_0 = arith.constant 0 : i32
    %c0_i32_1 = arith.constant 0 : i32
    return %arg0, %c0_i32, %c0_i32_0 : i32, i32, i32
  }
  func.func @transform_1(%arg0: i32) -> (i32, i32) {
    %c0_i32 = arith.constant 0 : i32
    %c0_i32_0 = arith.constant 0 : i32
    %c0_i32_1 = arith.constant 0 : i32
    return %c0_i32, %c0_i32_0 : i32, i32
  }
  func.func @transform_2(%arg0: i32) -> (i32, i32) {
    %c0_i32 = arith.constant 0 : i32
    %c0_i32_0 = arith.constant 0 : i32
    %c0_i32_1 = arith.constant 0 : i32
    return %c0_i32, %c0_i32_0 : i32, i32
  }
  func.func @transform_3(%arg0: i32) -> (i32, i32) {
    %c0_i32 = arith.constant 0 : i32
    %c0_i32_0 = arith.constant 0 : i32
    %c0_i32_1 = arith.constant 0 : i32
    return %c0_i32, %c0_i32_0 : i32, i32
  }
  func.func @transform_4(%arg0: i32) -> (i32, i32) {
    %c0_i32 = arith.constant 0 : i32
    %c0_i32_0 = arith.constant 0 : i32
    %c0_i32_1 = arith.constant 0 : i32
    return %c0_i32, %c0_i32_0 : i32, i32
  }
  func.func @transform_5(%arg0: i32) -> (i32, i32) {
    %c0_i32 = arith.constant 0 : i32
    %c0_i32_0 = arith.constant 0 : i32
    %c0_i32_1 = arith.constant 0 : i32
    return %c0_i32, %c0_i32_0 : i32, i32
  }
  func.func @transform_6(%arg0: i32) -> (i32, i32) {
    %c0_i32 = arith.constant 0 : i32
    %c0_i32_0 = arith.constant 0 : i32
    %c0_i32_1 = arith.constant 0 : i32
    return %c0_i32, %c0_i32_0 : i32, i32
  }
  func.func @transform_7(%arg0: i32) -> (i32, i32, i32) {
    %c0_i32 = arith.constant 0 : i32
    %c0_i32_0 = arith.constant 0 : i32
    %c0_i32_1 = arith.constant 0 : i32
    return %arg0, %c0_i32, %c0_i32_0 : i32, i32, i32
  }
}

</mosaic_0001>

<bundles_post_ra>
// kernel: tpu_custom_call.1
= control target key start
LH: loop header
LB: loop body
LE: loop exit
PB: predicated region body
PF: predicated region fallthrough
CT: control target
= control target key end

     0   :  { %12 = vsyncpa [#allocation3], 0  ;;  %s1614_s0 = inlined_call_operand.hbm [shape: f32[2,32,256], index: 0, kind: input, shape index: {}]   ;;  %s1615_s1 = inlined_call_operand.vmem [shape: f32[4,32], index: 1, kind: input, shape index: {}]   ;;  %s1616_s2 = inlined_call_operand.vmem [shape: f32[4,32], index: 2, kind: input, shape index: {}]   ;;  %s1617_s3 = inlined_call_operand.vmem [shape: f32[32,4], index: 3, kind: input, shape index: {}]   ;;  %s1618_s4 = inlined_call_operand.vmem [shape: f32[32,32], index: 4, kind: input, shape index: {}]   ;;  %s1619_s5 = inlined_call_operand.vmem [shape: f32[32,32], index: 5, kind: input, shape index: {}]   ;;  %s1620_s6 = inlined_call_operand.vmem [shape: f32[32,1], index: 6, kind: input, shape index: {}]   ;;  %s1621_s7 = inlined_call_operand.hbm [shape: f32[2,32,256], index: 7, kind: output, shape index: {}]  }
   0x1   :  { %14 = vsyncpa [#allocation3 + $0x1], 0 }
   0x2   :  { %15 = vsyncpa [#allocation4], 0 }
   0x3   :  { %17 = vsyncpa [#allocation4 + $0x1], 0  ;;  %s1310_s24 = smov 0   ;;  %s1312_s25 = smov 0  }
   0x4   :  { %s1314_s26 = smov 0   ;;  %s1316_s27 = smov 0  }
   0x5 LB: > { %s1331_s28 = sadd.s32 4294967295, %s1258_s27   ;;  %s966_s29 = sadd.s32 4294967294, %s1258_s27   ;;  %s1258_s27 = sphi %s1316_s27, %s1634_s27   ;;  %s1254_s26 = sphi %s1314_s26, %s1633_s26   ;;  %s1250_s25 = sphi %s1312_s25, %s1632_s25   ;;  %s1246_s24 = sphi %s1310_s24, %s1631_s24  }
   0x6   : > { %s1335_s30 = sadd.s32 1, %s1258_s27   ;;  %s30_s8 = sadd.s32 1, %s1254_s26 }
   0x7   : > { %s27_s9 = ssub.s32 %s1258_s27, %s1335_s30  ;;  %p37_p0 = scmp.ne.s32.totalorder %s1254_s26, %s1250_s25 }
   0x8   : > { %p28_p1 = scmp.eq.s32.totalorder %s27_s9, 0  ;;  %p38_p2 = scmp.eq.s32.totalorder %s1258_s27, 0 }
   0x9   : > { %p43_p3 = scmp.ne.s32.totalorder %s1250_s25, %s1246_s24  ;;  %p44_p4 = scmp.eq.s32.totalorder %s1331_s28, 0 }
   0xa   : > { %s1347_s10 = scalar_select %p28_p1, %s1254_s26, %s30_s8  }
   0xb   : > { %p1349_p5 = por %p38_p2, %p37_p0  ;;  %p1353_p6 = por %p44_p4, %p43_p3 }
   0xc   : > { %p193_p7 = scmp.eq.s32.totalorder %s1331_s28, 1  ;;  %p199_p8 = scmp.eq.s32.totalorder %s966_s29, 1 }
   0xd   : > { %p1110_p10 = scmp.lt.s32.totalorder %s1258_s27, 2  ;;  %s237_s15 = sand.u32 1, %s1254_s26  }
   0xe   : > { %p1360_p11 = por %p193_p7, %p37_p0  ;;  %p1364_p12 = por %p199_p8, %p43_p3 }
   0xf   : > { %s995_s16 = sshll.u32 %s1258_s27, 10  ;;  %s969_s17 = sshll.u32 %s237_s15, 6 }
  0x10   : > { %s1625_s13 = scalar_select %p1360_p11, 1, 0 }
  0x11   : > { %s1626_s14 = scalar_select %p1364_p12, 1, 0 }
  0x12   : > { %s1373_s20 = scalar_lea.hbm %s1614_s0, %s995_s16  ;;  %s241_s21 = scalar_lea.vmem [#allocation2], %s969_s17 }
  0x13   : > { %s248_s22 = sshll.u32 %s241_s21, 4  ;;  %p1377_p13 = pnand %p1110_p10, %p1349_p5  ;;  %s1381_s22 = int_to_ptr.vmem [resolvable:$true] %s248_s22 }
  0x14   : > { %s1383_s29 = scalar_lea.sflag [#allocation3], %s237_s15  ;;  %s1162_s8 = scalar_lea.hbm %s1373_s20, 1024 }
  0x15   : > { %p1163_p0 = scmp.ne.s32.totalorder %s1373_s20, %s1162_s8  ;;  %p1164_p1 = pneg %p1377_p13 }
  0x16   : > { %s1167_s16 = scalar_lea.hbm %s1614_s0, 2048  ;;  %p1168_p4 = scmp.lt.u32.totalorder %s1373_s20, %s1614_s0 }
  0x17   : > { %p1165_p2 = pnand %p1164_p1, %p1163_p0  ;;  %p1169_p5 = scmp.lt.u32.totalorder %s1167_s16, %s1162_s8 }
  0x18   : > { %p1171_p8 = scmp.lt.u32.totalorder %s1162_s8, %s1373_s20 }
  0x19   : > { %p1166_p3 = pneg %p1165_p2  ;;  %p1170_p7 = por %p1169_p5, %p1168_p4 }
  0x1b   : > { %p1172_p10 = por %p1171_p8, %p1170_p7 }
  0x1d   : > { %p1173_p9 = pnand %p1172_p10, %p1166_p3 }
  0x1f   : > { %1176 = shalt.err (!%p1173_p9)
}
  0x20   : > { %s1177_s15 = scalar_lea.vmem %s1381_s22, 1024  ;;  %s1260_s19 = smov [#allocation2]  }
  0x21   : > { %p1178_p0 = scmp.ne.s32.totalorder %s1381_s22, %s1177_s15  ;;  %s1182_s21 = sshll.u32 %s1260_s19, 4  ;;  %s1183_s21 = int_to_ptr.vmem [resolvable:$false] %s1182_s21 }
  0x22   : > { %s1184_s9 = scalar_lea.vmem %s1183_s21, 2048  ;;  %p1185_p11 = scmp.lt.s32.totalorder %s1381_s22, %s1183_s21 }
  0x23   : > { %p1180_p2 = pnand %p1178_p0, %p1164_p1  ;;  %p1186_p4 = scmp.lt.s32.totalorder %s1184_s9, %s1177_s15 }
  0x25   : > { %p1181_p12 = pneg %p1180_p2  ;;  %p1187_p5 = por %p1186_p4, %p1185_p11 }
  0x27   : > { %p1188_p7 = pnand %p1187_p5, %p1181_p12 }
  0x29   : > { %1191 = shalt.err (!%p1188_p7)
}
  0x2a   : > { %s1261_s8 = smov 256   ;;  %s1262_s11 = smov 16  }
  0x2b   : > { %1105 = dma.hbm_to_vmem [thread:$0]  (!%p1377_p13), %s1373_s20, 1024, %s1381_s22, %s1383_s29, %s1261_s8, %s1261_s8, %s1262_s11  }
  0x2c   : > { %p972_p9 = scmp.ge.s32.totalorder %s1258_s27, 1  ;;  %p256_p1 = scmp.lt.s32.totalorder %s1258_s27, 3 }
  0x2e   : > { %p257_p3 = pnand %p972_p9, %p256_p1 }
  0x2f   : > { %s1414_s16 = sand.u32 (!%p257_p3), 1, %s1250_s25  }
  0x30   : > { %260 = sbr.rel (%p257_p3) target bundleno = 1199 (0x4af), region = 48  ;;  %s973_s17 = sshll.u32 (!%p257_p3), %s1414_s16, 6 }
  0x31   : > { %s263_s18 = scalar_lea.sflag (!%p257_p3), [#allocation3], %s1414_s16  ;;  %s266_s15 = scalar_lea.vmem (!%p257_p3), [#allocation2], %s973_s17 }
  0x37   : > { %1237 = dma.done.wait (%p1353_p6), %s263_s18, 1024  }
  0x38   : > { %1239 = vsyncadd (%p1353_p6), %s263_s18, 4294966272  ;;  %v1424_v0 = vld [vmem:[%s266_s15 + $0x20] sm:$0xff]  ;;  %v1426_v1 = vld [vmem:[%s266_s15 + $0x28] sm:$0xff]  ;;  %v1263_v42 = vmov 0.0|0.0   ;;  %vm1264_vm0 = vmmov 0   ;;  %v1265_v43 = vmov 0.0  }
  0x39   : > { %v1428_v2 = vld [vmem:[%s266_s15] sm:$0xff]  ;;  %v311_v3 = vadd.f32 %v1426_v1, %v1424_v0  ;;  %v1432_v4 = vld [vmem:[%s266_s15 + $0x8] sm:$0xff]  ;;  %v1434_v5 = vld [vmem:[%s266_s15 + $0x30] sm:$0xff]  ;;  %1064 = vmatprep.subr.bf16.mxu0 %v1263_v42  ;;  %1028 = vmatprep.mubr.msk.f32.mxu0 %vm1264_vm0, %v1265_v43  ;;  %vm387_vm9 = vcmask 261120   ;;  %vm539_vm10 = vcmask 31744   ;;  %vm552_vm11 = vcmask 1043456  }
  0x3a   : > { %v1436_v6 = vld [vmem:[%s266_s15 + $0x38] sm:$0xff]  ;;  %v305_v7 = vadd.f32 %v1432_v4, %v1428_v2  ;;  %v1440_v8 = vld [vmem:[%s266_s15 + $0x10] sm:$0xff]  ;;  %s296_s12 = scalar_lea.vmem [#allocation5], %s973_s17  ;;  %s996_s22 = sshll.u32 %s1331_s28, 10 }
  0x3b   : > { %v1442_v9 = vld [vmem:[%s266_s15 + $0x18] sm:$0xff]  ;;  %312 = vadd.xlane.f32.xlu1 %v311_v3  ;;  %v314_v10 = vadd.f32 %v1436_v6, %v1434_v5  ;;  %s893_s20 = sshll.u32 %s296_s12, 4  ;;  %s1570_s29 = scalar_lea.hbm %s1621_s7, %s996_s22  ;;  %s1565_s20 = int_to_ptr.vmem [resolvable:$true] %s893_s20 }
  0x3c   : > { %306 = vadd.xlane.f32.xlu0 %v305_v7  ;;  %v308_v11 = vadd.f32 %v1442_v9, %v1440_v8  ;;  %s880_s19 = scalar_lea.sflag [#allocation4], %s1414_s16  ;;  %s1192_s21 = scalar_lea.vmem %s1565_s20, 1024 }
  0x3d   : > { %p1193_p6 = scmp.ne.s32.totalorder %s1565_s20, %s1192_s21  ;;  %p1628_p11 = scmp.ne.s32.totalorder %s1625_s13, 0 }
  0x3e   : > { %s1267_s28 = smov [#allocation5]  }
  0x3f   : > { %315 = vadd.xlane.f32.xlu1 %v314_v10  ;;  %p1194_p12 = pnand %p1193_p6, %p1628_p11  ;;  %s1196_s9 = sshll.u32 %s1267_s28, 4  ;;  %s1197_s9 = int_to_ptr.vmem [resolvable:$false] %s1196_s9 }
  0x40   : > { %309 = vadd.xlane.f32.xlu0 %v308_v11  ;;  %s1198_s8 = scalar_lea.vmem %s1197_s9, 2048  ;;  %p1199_p8 = scmp.lt.s32.totalorder %s1565_s20, %s1197_s9 }
  0x41   : > { %p1195_p13 = pneg %p1194_p12  ;;  %p1200_p10 = scmp.lt.s32.totalorder %s1198_s8, %s1192_s21 }
  0x43   : > { %p1201_p0 = por %p1200_p10, %p1199_p8 }
  0x45   : > { %p1202_p2 = pnand %p1201_p0, %p1195_p13 }
  0xc8   : > { %v313_v12 = vpop.xlane.xlu1 %312 }
  0xc9   : > { %v1448_v13 = vmul.f32 0.00390625, %v313_v12  ;;  %v307_v14 = vpop.xlane.xlu0 %306 }
  0xca   : > { %v1450_v15 = vmul.f32 0.00390625, %v307_v14 }
  0xcb   : > { %v325_v16 = vsub.f32 %v1424_v0, %v1448_v13  ;;  %v326_v17 = vsub.f32 %v1426_v1, %v1448_v13 }
  0xcc   : > { %v316_v18 = vpop.xlane.xlu1 %315  ;;  %v321_v19 = vsub.f32 %v1428_v2, %v1450_v15  ;;  %v322_v20 = vsub.f32 %v1432_v4, %v1450_v15 }
  0xcd   : > { %v1460_v21 = vmul.f32 0.00390625, %v316_v18  ;;  %v310_v22 = vpop.xlane.xlu0 %309  ;;  %v333_v23 = vmul.f32 %v325_v16, %v325_v16  ;;  %v334_v24 = vmul.f32 %v326_v17, %v326_v17 }
  0xce   : > { %v1462_v25 = vmul.f32 0.00390625, %v310_v22  ;;  %v329_v26 = vmul.f32 %v321_v19, %v321_v19  ;;  %v330_v27 = vmul.f32 %v322_v20, %v322_v20 }
  0xcf   : > { %v1074_v28 = vpack.c.bf16 %v1460_v21, %v1448_v13  ;;  %v327_v29 = vsub.f32 %v1434_v5, %v1460_v21  ;;  %v328_v30 = vsub.f32 %v1436_v6, %v1460_v21  ;;  %v343_v35 = vadd.f32 %v334_v24, %v333_v23  ;;  %v536_v13 = vld [vmem:[%s1617_s3 + $0x8] sm:$0xff]  ;;  %v537_v21 = vld [vmem:[%s1617_s3 + $0x10] sm:$0xff] }
  0xd0   : > { %v1071_v31 = vpack.c.bf16 %v1462_v25, %v1450_v15  ;;  %v337_v32 = vadd.f32 %v330_v27, %v329_v26  ;;  %v323_v33 = vsub.f32 %v1440_v8, %v1462_v25  ;;  %v324_v34 = vsub.f32 %v1442_v9, %v1462_v25  ;;  %v386_v26 = vld [vmem:[%s1616_s2] sm:$0xf] }
  0xd1   : > { %v335_v38 = vmul.f32 %v327_v29, %v327_v29  ;;  %v336_v39 = vmul.f32 %v328_v30, %v328_v30  ;;  %v385_v27 = vld [vmem:[%s1615_s1] sm:$0xf] }
  0xd2   : > { %338 = vadd.xlane.f32.xlu0 %v337_v32  ;;  %v331_v36 = vmul.f32 %v323_v33, %v323_v33  ;;  %v332_v37 = vmul.f32 %v324_v34, %v324_v34  ;;  %v535_v15 = vld [vmem:[%s1617_s3] sm:$0xff]  ;;  %v1086_v32 = vpack.c.bf16 %v1440_v8, %v1428_v2  ;;  %v1084_v33 = vpack.c.bf16 %v1442_v9, %v1432_v4 }
  0xd3   : > { %v346_v41 = vadd.f32 %v336_v39, %v335_v38  ;;  %1044 = vmatprep.mubr.msk.f32.mxu1 %vm539_vm10, %v535_v15  ;;  %v1088_v34 = vpack.c.bf16 %v1436_v6, %v1426_v1  ;;  %v644_v6 = vld [vmem:[%s1619_s5 + $0x18] sm:$0xff]  ;;  %v747_v38 = vld [vmem:[%s1618_s4 + $0x8] sm:$0xff]  ;;  %v748_v39 = vld [vmem:[%s1618_s4 + $0x10] sm:$0xff] }
  0xd4   : > { %v340_v40 = vadd.f32 %v332_v37, %v331_v36  ;;  %v746_v36 = vld [vmem:[%s1618_s4] sm:$0xff] }
  0xd6   : > { %344 = vadd.xlane.f32.xlu0 %v343_v35  ;;  %341 = vadd.xlane.f32.xlu1 %v340_v40  ;;  %v1090_v35 = vpack.c.bf16 %v1434_v5, %v1424_v0  ;;  %v642_v0 = vld [vmem:[%s1619_s5 + $0x8] sm:$0xff]  ;;  %v643_v5 = vld [vmem:[%s1619_s5 + $0x10] sm:$0xff]  ;;  %v749_v40 = vld [vmem:[%s1618_s4 + $0x18] sm:$0xff] }
  0xda   : > { %347 = vadd.xlane.f32.xlu1 %v346_v41  ;;  %v1266_v41 = vmov 0  }
  0xdb   : > { %1153 = vset.pattern.permute.xlu1 %v1266_v41  ;;  %1152 = vset.pattern.permute.xlu0 %v1266_v41 }
 0x15f   : > { %v339_v44 = vpop.xlane.xlu0 %338 }
 0x160   : > { %v349_v45 = vmul.f32 0.003921569, %v339_v44  ;;  %v646_v44 = vld [vmem:[%s1620_s6 + $0x8] sm:$0xff] }
 0x162   : > { %v353_v46 = vadd.f32 1e-05, %v349_v45  ;;  %v645_v45 = vld [vmem:[%s1620_s6] sm:$0xff] }
 0x163   : > { %v342_v47 = vpop.xlane.xlu1 %341  ;;  %v345_v48 = vpop.xlane.xlu0 %344 }
 0x164   : > { %1154 = vrsqrt.f32 %v353_v46  ;;  %v350_v49 = vmul.f32 0.003921569, %v342_v47  ;;  %v351_v50 = vmul.f32 0.003921569, %v345_v48  ;;  %vm359_vm1 = vcmp.eq.f32.partialorder %v353_v46, inf }
 0x165   : > { %v362_v62 = vand.u32 2147483648, %v353_v46  ;;  %vm361_vm3 = vcmp.eq.f32.partialorder %v353_v46, 0.0 }
 0x166   : > { %v354_v51 = vadd.f32 1e-05, %v350_v49  ;;  %v355_v52 = vadd.f32 1e-05, %v351_v50  ;;  %v647_v49 = vld [vmem:[%s1620_s6 + $0x10] sm:$0xff] }
 0x167   : > { %v348_v53 = vpop.xlane.xlu1 %347 }
 0x168   : > { %1156 = vrsqrt.f32 %v354_v51  ;;  %v352_v54 = vmul.f32 0.003921569, %v348_v53  ;;  %vm366_vm2 = vcmp.eq.f32.partialorder %v354_v51, inf  ;;  %v369_v63 = vand.u32 2147483648, %v354_v51 }
 0x169   : > { %1158 = vrsqrt.f32 %v355_v52  ;;  %vm368_vm4 = vcmp.eq.f32.partialorder %v354_v51, 0.0  ;;  %vm373_vm5 = vcmp.eq.f32.partialorder %v355_v52, inf  ;;  %v376_v18 = vand.u32 2147483648, %v355_v52 }
 0x16a   : > { %v356_v55 = vadd.f32 1e-05, %v352_v54  ;;  %vm375_vm7 = vcmp.eq.f32.partialorder %v355_v52, 0.0  ;;  %v648_v54 = vld [vmem:[%s1620_s6 + $0x18] sm:$0xff] }
 0x16c   : > { %1160 = vrsqrt.f32 %v356_v55  ;;  %vm380_vm6 = vcmp.eq.f32.partialorder %v356_v55, inf  ;;  %v383_v19 = vand.u32 2147483648, %v356_v55  ;;  %vm382_vm8 = vcmp.eq.f32.partialorder %v356_v55, 0.0 }
 0x16e   : > { %v1155_v56 = vpop.eup %1154 }
 0x16f   : > { %v358_v57 = vmul.f32 %v1155_v56, %v353_v46 }
 0x171   : > { %v360_v60 = vsel %vm359_vm1, %v353_v46, %v358_v57 }
 0x172   : > { %v1157_v58 = vpop.eup %1156  ;;  %v363_v11 = vsel %vm361_vm3, %v362_v62, %v360_v60 }
 0x173   : > { %v1159_v59 = vpop.eup %1158  ;;  %v365_v61 = vmul.f32 %v1157_v58, %v354_v51 }
 0x174   : > { %v372_v3 = vmul.f32 %v1159_v59, %v355_v52 }
 0x175   : > { %v367_v7 = vsel %vm366_vm2, %v354_v51, %v365_v61 }
 0x176   : > { %v1161_v10 = vpop.eup %1160  ;;  %v370_v12 = vsel %vm368_vm4, %v369_v63, %v367_v7  ;;  %v374_v16 = vsel %vm373_vm5, %v355_v52, %v372_v3 }
 0x177   : > { %v1065_v14 = vpack.c.bf16 %v370_v12, %v363_v11  ;;  %v379_v17 = vmul.f32 %v1161_v10, %v356_v55  ;;  %v377_v22 = vsel %vm375_vm7, %v376_v18, %v374_v16 }
 0x179   : > { %1066 = vmatpush3.bf16.msra.mxu0 %v1065_v14  ;;  %v381_v20 = vsel %vm380_vm6, %v356_v55, %v379_v17 }
 0x17a   : > { %1067 = vmatprep.subr.bf16.mxu0 %v1263_v42  ;;  %v384_v23 = vsel %vm382_vm8, %v383_v19, %v381_v20 }
 0x17b   : > { %v1068_v24 = vpack.c.bf16 %v384_v23, %v377_v22 }
 0x17d   : > { %1069 = vmatpush3.bf16.msra.mxu0 %v1068_v24 }
 0x17e   : > { %1070 = vmatprep.subr.bf16.mxu0 %v1263_v42 }
 0x180   : > { %1029 = vmatmul.mubr.msk.f32.vlgmr.msra.gmra.mrb[0].mxu0 %vm387_vm9, %v386_v26 }
 0x181   : > { %1072 = vmatpush3.bf16.msra.mxu0 %v1071_v31  ;;  %1039 = vmatprep.mubr.msk.f32.mxu0 %vm1264_vm0, %v1265_v43  ;;  %v641_v31 = vld [vmem:[%s1619_s5] sm:$0xff] }
 0x182   : > { %1073 = vmatprep.subr.bf16.mxu0 %v1263_v42 }
 0x185   : > { %1075 = vmatpush3.bf16.msra.mxu0 %v1074_v28  ;;  %v538_v28 = vld [vmem:[%s1617_s3 + $0x18] sm:$0xff] }
 0x186   : > { %1085 = vmatprep.subr.bf16.mxu0 %v1084_v33 }
 0x188   : > { %1040 = vmatmul.mubr.msk.f32.vlgmr.msra.gmra.mrb[0].mxu0 %vm387_vm9, %v385_v27 }
 0x189   : > { %846 = vmatprep.mubr.f32.mxu0 %v1265_v43  ;;  %1087 = vmatpush1.bf16.msra.mxu0 %v1086_v32 }
 0x18a   : > { %1089 = vmatprep.subr.bf16.mxu0 %v1088_v34 }
 0x18d   : > { %1091 = vmatpush1.bf16.msra.mxu0 %v1090_v35 }
 0x190   : > { %986 = vmatmul.mubr.msk.f32.vlgmr.msra.gmra.mrb[2].mxu0 %vm387_vm9, %v746_v36 }
 0x25b   : > { %v530_v25 = vpop.f32.mrb[0].mxu0 }
 0x25c   : > { %v534_v29 = vmax.f32 %v530_v25, 0.0  ;;  %v1041_v30 = vpop.f32.mrb[1].mxu0 }
 0x25e   : > { %1042 = vmatprep.subr.msk.mxu1 %vm552_vm11, %v534_v29 }
 0x25f   : > { %1043 = vmatpush3.msk.msra.mxu1 %vm552_vm11, %v534_v29 }
 0x260   : > { %1045 = vmatmul.mubr.msk.f32.vlgmr.msra.gmra.mrb[0].mxu1 %vm539_vm10, %v536_v13 }
 0x261   : > { %1047 = vmatprep.mubr.msk.f32.mxu1 %vm539_vm10, %v537_v21 }
 0x263   : > { %v848_v42 = vpop.f32.mrb[2].mxu0 }
 0x264   : > { %1048 = vmatmul.mubr.msk.f32.gmra.mrb[2].mxu1 %vm539_vm10, %v538_v28  ;;  %v850_v52 = vpop.f32.mrb[3].mxu0 }
 0x265   : > { %1058 = vmatprep.mubr.msk.f32.mxu1 %vm387_vm9, %v641_v31 }
 0x333   : > { %v1046_v2 = vpop.f32.mrb[0].mxu1 }
 0x334   : > { %v622_v8 = vpop.f32.mrb[1].mxu1 }
 0x335   : > { %v1076_v37 = vpack.c.bf16 %v1046_v2, %v622_v8 }
 0x337   : > { %v1049_v4 = vpop.f32.mrb[2].mxu1  ;;  %1077 = vmatprep.subr.bf16.mxu1 %v1076_v37 }
 0x338   : > { %v632_v9 = vpop.f32.mrb[3].mxu1  ;;  %1079 = vmatpush3.bf16.msra.mxu1 %v1076_v37 }
 0x339   : > { %v1080_v1 = vpack.c.bf16 %v1049_v4, %v632_v9 }
 0x33b   : > { %1081 = vmatprep.subr.bf16.mxu1 %v1080_v1 }
 0x33c   : > { %1083 = vmatpush3.bf16.msra.mxu1 %v1080_v1 }
 0x33d   : > { %1092 = vmatprep.subr.bf16.mxu1 %v1084_v33 }
 0x33f   : > { %1059 = vmatmul.mubr.msk.f32.vlgmr.msra.gmra.mrb[4].mxu1 %vm387_vm9, %v642_v0 }
 0x340   : > { %1061 = vmatprep.mubr.msk.f32.mxu1 %vm387_vm9, %v643_v5  ;;  %1094 = vmatpush1.bf16.msra.mxu1 %v1086_v32 }
 0x341   : > { %1093 = vmatprep.subr.bf16.mxu1 %v1088_v34 }
 0x343   : > { %1062 = vmatmul.mubr.msk.f32.gmra.mrb[6].mxu1 %vm387_vm9, %v644_v6 }
 0x344   : > { %1095 = vmatpush1.bf16.msra.mxu1 %v1090_v35  ;;  %852 = vmatprep.mubr.f32.mxu1 %v1265_v43 }
 0x347   : > { %987 = vmatmul.mubr.msk.f32.vlgmr.msra.gmra.mrb[8].mxu1 %vm387_vm9, %v747_v38 }
 0x348   : > { %858 = vmatprep.mubr.f32.mxu1 %v1265_v43 }
 0x34b   : > { %988 = vmatmul.mubr.msk.f32.gmra.mrb[10].mxu1 %vm387_vm9, %v748_v39 }
 0x34c   : > { %864 = vmatprep.mubr.f32.mxu1 %v1265_v43 }
 0x34f   : > { %989 = vmatmul.mubr.msk.f32.gmra.mrb[12].mxu1 %vm387_vm9, %v749_v40 }
 0x412   : > { %v1060_v46 = vpop.f32.mrb[4].mxu1 }
 0x413   : > { %v733_v43 = vadd.f32 %v1060_v46, %v646_v44  ;;  %v727_v47 = vpop.f32.mrb[5].mxu1 }
 0x414   : > { %v728_v48 = vadd.f32 %v727_v47, %v645_v45 }
 0x415   : > { %757 = vperm.xlu1 %1153, %v733_v43  }
 0x416   : > { %v1063_v50 = vpop.f32.mrb[6].mxu1  ;;  %752 = vperm.xlu0 %1152, %v728_v48  }
 0x417   : > { %v737_v51 = vpop.f32.mrb[7].mxu1  ;;  %v743_v57 = vadd.f32 %v1063_v50, %v648_v54 }
 0x418   : > { %v738_v53 = vadd.f32 %v737_v51, %v647_v49 }
 0x41a   : > { %762 = vperm.xlu1 %1153, %v738_v53   ;;  %v854_v55 = vpop.f32.mrb[8].mxu1 }
 0x41b   : > { %v856_v56 = vpop.f32.mrb[9].mxu1 }
 0x41e   : > { %767 = vperm.xlu1 %1153, %v743_v57   ;;  %v860_v58 = vpop.f32.mrb[10].mxu1 }
 0x41f   : > { %v862_v59 = vpop.f32.mrb[11].mxu1 }
 0x422   : > { %v866_v60 = vpop.f32.mrb[12].mxu1 }
 0x423   : > { %v868_v61 = vpop.f32.mrb[13].mxu1 }
 0x494   : > { %v758_v62 = vpop.permute.xlu1 %757 }
 0x495   : > { %v855_v63 = vadd.f32 %v854_v55, %v758_v62  ;;  %v857_v3 = vadd.f32 %v856_v56, %v758_v62  ;;  %v753_v7 = vpop.permute.xlu0 %752 }
 0x496   : > { %v849_v10 = vadd.f32 %v848_v42, %v753_v7  ;;  %v851_v11 = vadd.f32 %v850_v52, %v753_v7 }
 0x497   : > { %873 = vst [vmem:[%s296_s12 + $0x10] sm:$0xff] %v855_v63  ;;  %874 = vst [vmem:[%s296_s12 + $0x18] sm:$0xff] %v857_v3 }
 0x498   : > { %871 = vst [vmem:[%s296_s12] sm:$0xff] %v849_v10  ;;  %872 = vst [vmem:[%s296_s12 + $0x8] sm:$0xff] %v851_v11 }
 0x499   : > { %v763_v12 = vpop.permute.xlu1 %762 }
 0x49a   : > { %v861_v14 = vadd.f32 %v860_v58, %v763_v12  ;;  %v863_v16 = vadd.f32 %v862_v59, %v763_v12 }
 0x49c   : > { %875 = vst [vmem:[%s296_s12 + $0x20] sm:$0xff] %v861_v14  ;;  %876 = vst [vmem:[%s296_s12 + $0x28] sm:$0xff] %v863_v16 }
 0x49d   : > { %v768_v17 = vpop.permute.xlu1 %767 }
 0x49e   : > { %v867_v18 = vadd.f32 %v866_v60, %v768_v17  ;;  %v869_v19 = vadd.f32 %v868_v61, %v768_v17 }
 0x4a0   : > { %877 = vst [vmem:[%s296_s12 + $0x30] sm:$0xff] %v867_v18  ;;  %878 = vst [vmem:[%s296_s12 + $0x38] sm:$0xff] %v869_v19 }
 0x4a1   : > { %1205 = shalt.err (!%p1202_p2)
}
 0x4a2   : > { %s1206_s11 = scalar_lea.hbm %s1570_s29, 1024  ;;  %s1210_s12 = scalar_lea.hbm %s1621_s7, 2048 }
 0x4a3   : > { %p1207_p4 = scmp.ne.s32.totalorder %s1570_s29, %s1206_s11  ;;  %p1211_p9 = scmp.lt.u32.totalorder %s1570_s29, %s1621_s7 }
 0x4a4   : > { %p1212_p1 = scmp.lt.u32.totalorder %s1210_s12, %s1206_s11  ;;  %p1214_p6 = scmp.lt.u32.totalorder %s1206_s11, %s1570_s29 }
 0x4a5   : > { %p1208_p5 = pnand %p1207_p4, %p1628_p11 }
 0x4a6   : > { %p1213_p3 = por %p1212_p1, %p1211_p9 }
 0x4a7   : > { %p1209_p7 = pneg %p1208_p5 }
 0x4a8   : > { %p1215_p12 = por %p1214_p6, %p1213_p3 }
 0x4aa   : > { %p1216_p13 = pnand %p1215_p12, %p1209_p7 }
 0x4ac   : > { %1219 = shalt.err (!%p1216_p13)
}
 0x4ad   : > { %s1268_s23 = smov 256   ;;  %s1269_s21 = smov 16  }
 0x4ae   : > { %1100 = dma.vmem_to_hbm [thread:$0]  (%p1628_p11), %s1565_s20, 1024, %s1570_s29, %s880_s19, %s1268_s23, %s1268_s23, %s1269_s21  }
 0x4af PF: > { %s908_s28 = sand.u32 1, %s1246_s24   ;;  %p1629_p8 = scmp.ne.s32.totalorder %s1626_s14, 0 }
 0x4b0   : > { %p1630_p10 = scmp.ge.s32.totalorder %s1258_s27, 2  ;;  %s909_s9 = scalar_lea.sflag [#allocation4], %s908_s28 }
 0x4b2   : > { %p1107_p0 = pnand %p1630_p10, %p1629_p8 }
 0x4b4   : > { %1241 = dma.done.wait (!%p1107_p0), %s909_s9, 1024  }
 0x4b5   : > { %1243 = vsyncadd (!%p1107_p0), %s909_s9, 4294966272  ;;  %p20_p2 = scmp.ge.s32.totalorder %s1335_s30, 4   ;;  %s1631_s24 = smov %s1250_s25 }
 0x4b6   : > { %s1632_s25 = smov %s1254_s26  ;;  %s1633_s26 = smov %s1347_s10 }
 0x4b7   : > { %s1634_s27 = smov %s1335_s30  ;;  %22 = sbr.rel (!%p20_p2) target bundleno = 5 (0x5), region = 93 }
 0x4be   :  { %914 = vsyncpa [#allocation3], 1 }
 0x4bf   :  { %916 = vsyncpa [#allocation3 + $0x1], 1 }
 0x4c0   :  { %917 = vsyncpa [#allocation4], 1 }
 0x4c1   :  { %919 = vsyncpa [#allocation4 + $0x1], 1 }

</bundles_post_ra>
